<compile_context>
chip_gen: v5e
topology: v5e:2x2
jax: 0.10.0
libtpu: 0.0.40
codegen_flags: <defaults>
</compile_context>

<pallas_src>
import functools

import jax
import jax.numpy as jnp
from jax import lax
from jax.experimental import pallas as pl
from jax.experimental.pallas import tpu as pltpu

EPS = 1e-5  # torch.nn.GroupNorm default eps


# --------------------------------------------------------------------------------------
# Shared in-kernel helpers
# --------------------------------------------------------------------------------------
def _stats_to_channel(s1, s2, gmat, gmatT, n):
    """Per-channel sums (over T) -> per-channel (mean, inv_std) via tiny group matmuls."""
    sum_g = jnp.dot(s1, gmatT, preferred_element_type=jnp.float32)       # (Bb, G)
    sumsq_g = jnp.dot(s2, gmatT, preferred_element_type=jnp.float32)     # (Bb, G)
    mean_g = sum_g / n
    var_g = jnp.maximum(sumsq_g / n - mean_g * mean_g, 0.0)              # cancellation guard
    inv_g = lax.rsqrt(var_g + EPS)
    mean_c = jnp.dot(mean_g, gmat, preferred_element_type=jnp.float32)   # (Bb, C)
    inv_c = jnp.dot(inv_g, gmat, preferred_element_type=jnp.float32)     # (Bb, C)
    return mean_c, inv_c


def _fold(mean_c, inv_c, gamma, beta, w_f32, wT_f32, bias):
    """Fold GroupNorm (+affine) into the 1x1 conv: per-batch W' and b' (all f32)."""
    scale_c = gamma * inv_c                                               # (Bb, C)
    shift_c = beta - mean_c * scale_c                                     # (Bb, C)
    w_fold = w_f32[None, :, :] * scale_c[:, None, :]                      # (Bb, O, C)
    b_fold = jnp.dot(shift_c, wT_f32, preferred_element_type=jnp.float32) + bias   # (Bb, O)
    return w_fold, b_fold


# --------------------------------------------------------------------------------------
# Kernel 1: single-pass (whole T resident per batch block)
# --------------------------------------------------------------------------------------
def _single_pass_kernel(x_ref, gmat_ref, gmatT_ref, gamma_ref, beta_ref,
                        w_ref, wT_ref, b_ref, o_ref, *, matmul_dtype):
    x = x_ref[...]                                   # (Bb, C, T) in the caller's dtype
    Bb, C, T = x.shape
    G = gmat_ref.shape[0]
    n = (C // G) * T                                 # elements reduced per (batch, group)

    # --- GroupNorm statistics (f32) ---
    xf = x.astype(jnp.float32)
    s1 = jnp.sum(xf, axis=2)                         # (Bb, C)
    s2 = jnp.sum(xf * xf, axis=2)                    # (Bb, C)
    mean_c, inv_c = _stats_to_channel(s1, s2, gmat_ref[...], gmatT_ref[...], n)

    # --- Fold norm + affine into the conv (f32) ---
    w_fold, b_fold = _fold(mean_c, inv_c,
                           gamma_ref[...].astype(jnp.float32),
                           beta_ref[...].astype(jnp.float32),
                           w_ref[...].astype(jnp.float32),
                           wT_ref[...].astype(jnp.float32),
                           b_ref[...].astype(jnp.float32))

    # --- Single large op: batched channel-mixing matmul on the MXU ---
    y = jnp.einsum("boc,bct->bot",
                   w_fold.astype(matmul_dtype), x.astype(matmul_dtype),
                   preferred_element_type=jnp.float32)             # (Bb, O, T)
    o_ref[...] = (y + b_fold[:, :, None]).astype(o_ref.dtype)      # lane-dense (T last) store


# --------------------------------------------------------------------------------------
# Kernel 2: two-pass T-tiled fallback (stats pass then apply pass) for huge C*T per batch
# --------------------------------------------------------------------------------------
def _two_pass_kernel(x_ref, gmat_ref, gmatT_ref, gamma_ref, beta_ref,
                     w_ref, wT_ref, b_ref, o_ref,
                     s1_acc, s2_acc, wfold_sc, bfold_sc, *, matmul_dtype, t_total):
    p = pl.program_id(1)          # 0 = stats pass, 1 = apply pass
    t = pl.program_id(2)
    nt = pl.num_programs(2)
    x = x_ref[...]                # (Bb, C, Tt)
    Bb, C, Tt = x.shape
    G = gmat_ref.shape[0]

    @pl.when(p == 0)
    def _stats_pass():
        # Mask lanes past the true sequence length (partial last T tile).
        col = lax.broadcasted_iota(jnp.int32, (Bb, C, Tt), 2) + t * Tt
        xf = jnp.where(col < t_total, x.astype(jnp.float32), 0.0)

        @pl.when(t == 0)
        def _init():
            s1_acc[...] = jnp.zeros_like(s1_acc)
            s2_acc[...] = jnp.zeros_like(s2_acc)

        s1_acc[...] += jnp.sum(xf, axis=2)
        s2_acc[...] += jnp.sum(xf * xf, axis=2)

        @pl.when(t == nt - 1)
        def _finalize():
            n = (C // G) * t_total
            mean_c, inv_c = _stats_to_channel(s1_acc[...], s2_acc[...],
                                              gmat_ref[...], gmatT_ref[...], n)
            w_fold, b_fold = _fold(mean_c, inv_c,
                                   gamma_ref[...].astype(jnp.float32),
                                   beta_ref[...].astype(jnp.float32),
                                   w_ref[...].astype(jnp.float32),
                                   wT_ref[...].astype(jnp.float32),
                                   b_ref[...].astype(jnp.float32))
            wfold_sc[...] = w_fold
            bfold_sc[...] = b_fold

    @pl.when(p == 1)
    def _apply_pass():
        y = jnp.einsum("boc,bct->bot",
                       wfold_sc[...].astype(matmul_dtype), x.astype(matmul_dtype),
                       preferred_element_type=jnp.float32)          # (Bb, O, Tt)
        o_ref[...] = (y + bfold_sc[...][:, :, None]).astype(o_ref.dtype)


# --------------------------------------------------------------------------------------
# Wrapper: hardware query, block planning, pallas_call
# --------------------------------------------------------------------------------------
def _tpu_vmem_and_cores():
    """Best-effort (VMEM capacity, TensorCores-per-device); conservative fallbacks."""
    vmem = 64 << 20                       # conservative default (v7x per-TensorCore VMEM)
    try:
        vmem = int(pltpu.get_tpu_info().vmem_capacity_bytes)
    except Exception:
        pass
    cores = 1
    try:
        dev = jax.devices()[0]
        kind = str(getattr(dev, "device_kind", "")).lower()
        cores = int(getattr(dev, "num_cores_per_chip", getattr(dev, "num_cores", 1)) or 1)
        if cores <= 1 and any(tag in kind for tag in ("v4", "7x")):
            cores = 2                     # 2 TensorCores per chip
    except Exception:
        pass
    return vmem, cores


def _plan_blocks(B, C, T, O, G, x_bytes, out_bytes, mm_bytes, vmem_cap, cores,
                 block_batch=None, block_t=None):
    """Pick (batch_block, t_tile_or_None, estimated_resident_bytes)."""
    budget = int(vmem_cap * 0.6)          # headroom for compiler scratch / semaphores
    const_bytes = (2 * G * C + 2 * C + 2 * O * C + O) * 4 + (1 << 20)

    def single_pass_bytes(bb):
        x_blk = bb * C * T * x_bytes
        o_blk = bb * O * T * out_bytes
        stats_tmp = 2 * bb * C * T * 4                       # xf32 and xf32*xf32
        mm_x = bb * C * T * mm_bytes if mm_bytes != x_bytes else 0
        acc = bb * O * T * 4                                 # f32 matmul accumulator
        w_fold = bb * O * C * (4 + mm_bytes)                 # f32 fold + matmul-dtype copy
        return 2 * x_blk + 2 * o_blk + stats_tmp + mm_x + acc + w_fold + const_bytes

    def two_pass_bytes(tt):
        x_blk = C * tt * x_bytes
        o_blk = O * tt * out_bytes
        stats_tmp = 2 * C * tt * 4
        mm_x = C * tt * mm_bytes if mm_bytes != x_bytes else 0
        acc = O * tt * 4
        scratch = (2 * C + O * C + O) * 4
        return 2 * x_blk + 2 * o_blk + stats_tmp + mm_x + acc + scratch + const_bytes

    if block_t is not None:                                   # forced T-tiled path
        bb = 1 if block_batch is None else block_batch
        return bb, block_t, two_pass_bytes(block_t)
    if block_batch is not None:                               # forced batch block
        return block_batch, None, single_pass_bytes(block_batch)

    # Only force >= 2 grid steps when both TensorCores need work (v7x / megacore);
    # on single-TC parts (v5e/v6e) prefer one biggest block (less per-step overhead).
    min_steps = 2 if (cores >= 2 and B >= 2) else 1

    if single_pass_bytes(1) <= budget:
        bb = 1
        for cand in range(1, B + 1):
            if single_pass_bytes(cand) > budget:
                break
            if min_steps > 1 and pl.cdiv(B, cand) < min_steps:
                break
            bb = cand
        return bb, None, single_pass_bytes(bb)

    # A single batch does not fit (e.g. very large C*T on v7x's 64 MiB): T-tiled two-pass.
    tt = 128
    cand = 128
    while cand <= T and two_pass_bytes(cand) <= budget:
        tt = cand
        cand += 128
    if two_pass_bytes(tt) > budget:
        raise ValueError("Conv1DFinalLayer kernel: channel dim too large for VMEM even with T tiling")
    return 1, tt, two_pass_bytes(tt)


def conv1d_final_layer(x, gamma, beta, weight, bias, num_groups=16,
                       matmul_dtype=None, block_batch=None, block_t=None):
    """GroupNorm(num_groups, C) followed by Conv1d(C, O, kernel_size=1).

    x: (B, C, T); gamma/beta: (C,); weight: (O, C) or (O, C, 1); bias: (O,).
    Output: (B, O, T) in x.dtype.
    """
    B, C, T = x.shape
    if weight.ndim == 3:                          # PyTorch Conv1d weight (O, C, 1)
        weight = weight.reshape(weight.shape[0], weight.shape[1])
    O = weight.shape[0]
    G = num_groups
    assert C % G == 0, "hidden_size must be divisible by num_groups"

    if matmul_dtype is None:
        # bf16 MXU operands only when x is already sub-32-bit; f32 is free at this arithmetic
        # intensity (HBM-bound) and keeps the result bit-close to the PyTorch reference.
        matmul_dtype = jnp.bfloat16 if jnp.dtype(x.dtype).itemsize <= 2 else jnp.float32

    # Group-membership matrix (G, C) and its transpose, built OUTSIDE the kernel.
    gmat = (jnp.arange(C)[None, :] // (C // G) == jnp.arange(G)[:, None]).astype(jnp.float32)
    gmatT = jnp.transpose(gmat)

    gamma2 = gamma.reshape(1, C).astype(jnp.float32)
    beta2 = beta.reshape(1, C).astype(jnp.float32)
    bias2 = bias.reshape(1, O).astype(jnp.float32)
    w = weight.astype(jnp.float32)
    wT = jnp.transpose(w)

    vmem_cap, cores = _tpu_vmem_and_cores()
    x_bytes = jnp.dtype(x.dtype).itemsize
    mm_bytes = jnp.dtype(matmul_dtype).itemsize
    bb, tt, resident = _plan_blocks(B, C, T, O, G, x_bytes, x_bytes, mm_bytes,
                                    vmem_cap, cores, block_batch, block_t)
    vmem_limit = int(min(vmem_cap * 0.9, max(16 << 20, resident * 1.25 + (4 << 20))))

    out_shape = jax.ShapeDtypeStruct((B, O, T), x.dtype)
    operands = (x, gmat, gmatT, gamma2, beta2, w, wT, bias2)

    if tt is None:
        # ---------------- Single-pass path: whole T per batch block ----------------
        grid = (pl.cdiv(B, bb),)                     # cdiv: partial last batch block is clipped
        kernel = functools.partial(_single_pass_kernel, matmul_dtype=matmul_dtype)
        return pl.pallas_call(
            kernel,
            out_shape=out_shape,
            grid_spec=pltpu.PrefetchScalarGridSpec(
                num_scalar_prefetch=0,
                grid=grid,
                in_specs=[
                    pl.BlockSpec((bb, C, T), lambda i: (i, 0, 0)),
                    pl.BlockSpec((G, C), lambda i: (0, 0)),
                    pl.BlockSpec((C, G), lambda i: (0, 0)),
                    pl.BlockSpec((1, C), lambda i: (0, 0)),
                    pl.BlockSpec((1, C), lambda i: (0, 0)),
                    pl.BlockSpec((O, C), lambda i: (0, 0)),
                    pl.BlockSpec((C, O), lambda i: (0, 0)),
                    pl.BlockSpec((1, O), lambda i: (0, 0)),
                ],
                out_specs=pl.BlockSpec((bb, O, T), lambda i: (i, 0, 0)),
            ),
            compiler_params=pltpu.CompilerParams(
                dimension_semantics=("parallel",),
                vmem_limit_bytes=vmem_limit,
            ),
        )(*operands)

    # ---------------- Two-pass T-tiled fallback path ----------------
    grid = (pl.cdiv(B, bb), 2, pl.cdiv(T, tt))
    kernel = functools.partial(_two_pass_kernel, matmul_dtype=matmul_dtype, t_total=T)
    return pl.pallas_call(
        kernel,
        out_shape=out_shape,
        grid_spec=pltpu.PrefetchScalarGridSpec(
            num_scalar_prefetch=0,
            grid=grid,
            in_specs=[
                pl.BlockSpec((bb, C, tt), lambda b, p, t: (b, 0, t)),
                pl.BlockSpec((G, C), lambda b, p, t: (0, 0)),
                pl.BlockSpec((C, G), lambda b, p, t: (0, 0)),
                pl.BlockSpec((1, C), lambda b, p, t: (0, 0)),
                pl.BlockSpec((1, C), lambda b, p, t: (0, 0)),
                pl.BlockSpec((O, C), lambda b, p, t: (0, 0)),
                pl.BlockSpec((C, O), lambda b, p, t: (0, 0)),
                pl.BlockSpec((1, O), lambda b, p, t: (0, 0)),
            ],
            # Pass 0 (stats) never writes; pin its output block index at t=0 so every output
            # tile has a single contiguous residency window and is flushed exactly once,
            # after pass 1 fills it (no doubled HBM output writes, no block revisits).
            out_specs=pl.BlockSpec((bb, O, tt), lambda b, p, t: (b, 0, t * p)),
            scratch_shapes=[
                pltpu.VMEM((bb, C), jnp.float32),       # sum(x)   accumulator
                pltpu.VMEM((bb, C), jnp.float32),       # sum(x^2) accumulator
                pltpu.VMEM((bb, O, C), jnp.float32),    # folded weight (per batch block)
                pltpu.VMEM((bb, O), jnp.float32),       # folded bias
            ],
        ),
        compiler_params=pltpu.CompilerParams(
            dimension_semantics=("parallel", "arbitrary", "arbitrary"),
            vmem_limit_bytes=vmem_limit,
        ),
    )(*operands)


# --------------------------------------------------------------------------------------
# Pure-JAX reference (matches torch GroupNorm(16, C) + Conv1d(C, O, 1))
# --------------------------------------------------------------------------------------
def _reference(x, gamma, beta, weight, bias, num_groups=16):
    B, C, T = x.shape
    G = num_groups
    xg = x.reshape(B, G, C // G, T).astype(jnp.float32)
    mean = xg.mean(axis=(2, 3), keepdims=True)
    var = xg.var(axis=(2, 3), keepdims=True)
    xn = ((xg - mean) / jnp.sqrt(var + EPS)).reshape(B, C, T)
    xn = xn * gamma[None, :, None] + beta[None, :, None]
    return jnp.einsum("oc,bct->bot", weight.astype(jnp.float32), xn) + bias[None, :, None]


if __name__ == "__main__":
    # Shapes consistent with the module: hidden_size=32 (divisible by 16 groups),
    # out_channels=8, batch=2, sequence length T=128.
    B, C, O, T = 2, 32, 8, 128
    key = jax.random.PRNGKey(0)
    kx, kg, kb, kw, kc = jax.random.split(key, 5)

    x = jax.random.normal(kx, (B, C, T), dtype=jnp.float32)
    gamma = jax.random.normal(kg, (C,), dtype=jnp.float32) * 0.1 + 1.0   # GroupNorm weight
    beta = jax.random.normal(kb, (C,), dtype=jnp.float32) * 0.1          # GroupNorm bias
    weight = jax.random.normal(kw, (O, C), dtype=jnp.float32) * (1.0 / jnp.sqrt(C))
    bias = jax.random.normal(kc, (O,), dtype=jnp.float32) * 0.1

    ref = _reference(x, gamma, beta, weight, bias)

    # 1) Main single-pass path (f32 activations -> f32 MXU operands, bit-close to reference).
    out = jax.block_until_ready(conv1d_final_layer(x, gamma, beta, weight, bias))
    assert out.shape == (B, O, T) and out.dtype == x.dtype
    err = float(jnp.max(jnp.abs(out - ref)))
    assert jnp.allclose(out, ref, atol=1e-3, rtol=1e-3), err

    # 2) bf16 activations (halved HBM traffic; bf16 MXU operands, f32 stats/accumulation).
    x_bf = x.astype(jnp.bfloat16)
    out_bf = jax.block_until_ready(conv1d_final_layer(x_bf, gamma, beta, weight, bias))
    ref_bf = _reference(x_bf.astype(jnp.float32), gamma, beta, weight, bias)
    assert out_bf.dtype == jnp.bfloat16
    err_bf = float(jnp.max(jnp.abs(out_bf.astype(jnp.float32) - ref_bf)))
    assert jnp.allclose(out_bf.astype(jnp.float32), ref_bf, atol=6e-2, rtol=6e-2), err_bf

    # 3) T-tiled two-pass fallback, forced (path used when one batch exceeds the VMEM budget).
    T2 = 256
    x2 = jax.random.normal(kx, (B, C, T2), dtype=jnp.float32)
    out2 = jax.block_until_ready(conv1d_final_layer(x2, gamma, beta, weight, bias, block_t=128))
    ref2 = _reference(x2, gamma, beta, weight, bias)
    err2 = float(jnp.max(jnp.abs(out2 - ref2)))
    assert jnp.allclose(out2, ref2, atol=1e-3, rtol=1e-3), err2

    # 4) Non-divisor batch size, forced bb=2 (cdiv grid + clipped partial last batch block).
    B3 = 3
    x3 = jax.random.normal(kx, (B3, C, T), dtype=jnp.float32)
    out3 = jax.block_until_ready(conv1d_final_layer(x3, gamma, beta, weight, bias, block_batch=2))
    ref3 = _reference(x3, gamma, beta, weight, bias)
    err3 = float(jnp.max(jnp.abs(out3 - ref3)))
    assert jnp.allclose(out3, ref3, atol=1e-3, rtol=1e-3), err3

    print("KERNEL_OK")
</pallas_src>

<mosaic_0001>
module attributes {stable_mosaic.version = 11 : i64} {
  func.func @_single_pass_kernel(%arg0: i32, %arg1: memref<2x32x128xf32, #tpu.memory_space<vmem>>, %arg2: memref<16x32xf32, #tpu.memory_space<vmem>>, %arg3: memref<32x16xf32, #tpu.memory_space<vmem>>, %arg4: memref<1x32xf32, #tpu.memory_space<vmem>>, %arg5: memref<1x32xf32, #tpu.memory_space<vmem>>, %arg6: memref<8x32xf32, #tpu.memory_space<vmem>>, %arg7: memref<32x8xf32, #tpu.memory_space<vmem>>, %arg8: memref<1x8xf32, #tpu.memory_space<vmem>>, %arg9: memref<2x8x128xf32, #tpu.memory_space<vmem>>) attributes {dimension_semantics = [#tpu.dimension_semantics<parallel>], iteration_bounds = array<i64: 1>, scalar_prefetch = 0 : i64, scratch_operands = 0 : i64, tpu.core_type = #tpu.core_type<tc>, window_params = [{transform_indices = @transform_0, window_bounds = array<i64: 2, 32, 128>}, {pipeline_mode = #tpu.pipeline_mode<synchronous>, transform_indices = @transform_1, window_bounds = array<i64: 16, 32>}, {pipeline_mode = #tpu.pipeline_mode<synchronous>, transform_indices = @transform_2, window_bounds = array<i64: 32, 16>}, {pipeline_mode = #tpu.pipeline_mode<synchronous>, transform_indices = @transform_3, window_bounds = array<i64: 1, 32>}, {pipeline_mode = #tpu.pipeline_mode<synchronous>, transform_indices = @transform_4, window_bounds = array<i64: 1, 32>}, {pipeline_mode = #tpu.pipeline_mode<synchronous>, transform_indices = @transform_5, window_bounds = array<i64: 8, 32>}, {pipeline_mode = #tpu.pipeline_mode<synchronous>, transform_indices = @transform_6, window_bounds = array<i64: 32, 8>}, {pipeline_mode = #tpu.pipeline_mode<synchronous>, transform_indices = @transform_7, window_bounds = array<i64: 1, 8>}, {transform_indices = @transform_8, window_bounds = array<i64: 2, 8, 128>}]} {
    %c0 = arith.constant 0 : index
    %c0_0 = arith.constant 0 : index
    %c0_1 = arith.constant 0 : index
    %0 = vector.load %arg1[%c0, %c0_0, %c0_1] : memref<2x32x128xf32, #tpu.memory_space<vmem>>, vector<2x32x128xf32>
    %cst = arith.constant dense<0.000000e+00> : vector<2x32xf32>
    %1 = vector.multi_reduction <add>, %0, %cst [2] : vector<2x32x128xf32> to vector<2x32xf32>
    %2 = arith.mulf %0, %0 : vector<2x32x128xf32>
    %cst_2 = arith.constant dense<0.000000e+00> : vector<2x32xf32>
    %3 = vector.multi_reduction <add>, %2, %cst_2 [2] : vector<2x32x128xf32> to vector<2x32xf32>
    %c0_3 = arith.constant 0 : index
    %c0_4 = arith.constant 0 : index
    %4 = vector.load %arg2[%c0_3, %c0_4] : memref<16x32xf32, #tpu.memory_space<vmem>>, vector<16x32xf32>
    %c0_5 = arith.constant 0 : index
    %c0_6 = arith.constant 0 : index
    %5 = vector.load %arg3[%c0_5, %c0_6] : memref<32x16xf32, #tpu.memory_space<vmem>>, vector<32x16xf32>
    %cst_7 = arith.constant dense<0.000000e+00> : vector<2x16xf32>
    %6 = tpu.matmul %1, %5, %cst_7 {dimension_numbers = #tpu.dot_dimension_numbers<[1], [0], [0], [1], [0, 0, 1, 1], [], []>} : vector<2x32xf32>, vector<32x16xf32>, vector<2x16xf32> -> vector<2x16xf32>
    %cst_8 = arith.constant dense<0.000000e+00> : vector<2x16xf32>
    %7 = tpu.matmul %3, %5, %cst_8 {dimension_numbers = #tpu.dot_dimension_numbers<[1], [0], [0], [1], [0, 0, 1, 1], [], []>} : vector<2x32xf32>, vector<32x16xf32>, vector<2x16xf32> -> vector<2x16xf32>
    %cst_9 = arith.constant 2.560000e+02 : f32
    %8 = vector.broadcast %cst_9 : f32 to vector<2x16xf32>
    %9 = arith.divf %6, %8 : vector<2x16xf32>
    %cst_10 = arith.constant 2.560000e+02 : f32
    %10 = vector.broadcast %cst_10 : f32 to vector<2x16xf32>
    %11 = arith.divf %7, %10 : vector<2x16xf32>
    %12 = arith.mulf %9, %9 : vector<2x16xf32>
    %13 = arith.subf %11, %12 : vector<2x16xf32>
    %cst_11 = arith.constant 0.000000e+00 : f32
    %14 = vector.broadcast %cst_11 : f32 to vector<2x16xf32>
    %15 = arith.maximumf %13, %14 : vector<2x16xf32>
    %cst_12 = arith.constant 9.99999974E-6 : f32
    %16 = vector.broadcast %cst_12 : f32 to vector<2x16xf32>
    %17 = arith.addf %15, %16 : vector<2x16xf32>
    %18 = math.rsqrt %17 : vector<2x16xf32>
    %cst_13 = arith.constant dense<0.000000e+00> : vector<2x32xf32>
    %19 = tpu.matmul %9, %4, %cst_13 {dimension_numbers = #tpu.dot_dimension_numbers<[1], [0], [0], [1], [0, 0, 1, 1], [], []>} : vector<2x16xf32>, vector<16x32xf32>, vector<2x32xf32> -> vector<2x32xf32>
    %cst_14 = arith.constant dense<0.000000e+00> : vector<2x32xf32>
    %20 = tpu.matmul %18, %4, %cst_14 {dimension_numbers = #tpu.dot_dimension_numbers<[1], [0], [0], [1], [0, 0, 1, 1], [], []>} : vector<2x16xf32>, vector<16x32xf32>, vector<2x32xf32> -> vector<2x32xf32>
    %c0_15 = arith.constant 0 : index
    %c0_16 = arith.constant 0 : index
    %21 = vector.load %arg4[%c0_15, %c0_16] : memref<1x32xf32, #tpu.memory_space<vmem>>, vector<1x32xf32>
    %c0_17 = arith.constant 0 : index
    %c0_18 = arith.constant 0 : index
    %22 = vector.load %arg5[%c0_17, %c0_18] : memref<1x32xf32, #tpu.memory_space<vmem>>, vector<1x32xf32>
    %c0_19 = arith.constant 0 : index
    %c0_20 = arith.constant 0 : index
    %23 = vector.load %arg6[%c0_19, %c0_20] : memref<8x32xf32, #tpu.memory_space<vmem>>, vector<8x32xf32>
    %c0_21 = arith.constant 0 : index
    %c0_22 = arith.constant 0 : index
    %24 = vector.load %arg7[%c0_21, %c0_22] : memref<32x8xf32, #tpu.memory_space<vmem>>, vector<32x8xf32>
    %c0_23 = arith.constant 0 : index
    %c0_24 = arith.constant 0 : index
    %25 = vector.load %arg8[%c0_23, %c0_24] : memref<1x8xf32, #tpu.memory_space<vmem>>, vector<1x8xf32>
    %26 = vector.broadcast %21 : vector<1x32xf32> to vector<2x32xf32>
    %27 = arith.mulf %26, %20 : vector<2x32xf32>
    %28 = arith.mulf %19, %27 : vector<2x32xf32>
    %29 = vector.broadcast %22 : vector<1x32xf32> to vector<2x32xf32>
    %30 = arith.subf %29, %28 : vector<2x32xf32>
    %31 = vector.shape_cast %23 : vector<8x32xf32> to vector<1x8x32xf32>
    %32 = vector.shape_cast %27 : vector<2x32xf32> to vector<2x1x32xf32>
    %33 = vector.broadcast %31 : vector<1x8x32xf32> to vector<2x8x32xf32>
    %34 = vector.broadcast %32 : vector<2x1x32xf32> to vector<2x8x32xf32>
    %35 = arith.mulf %33, %34 : vector<2x8x32xf32>
    %cst_25 = arith.constant dense<0.000000e+00> : vector<2x8xf32>
    %36 = tpu.matmul %30, %24, %cst_25 {dimension_numbers = #tpu.dot_dimension_numbers<[1], [0], [0], [1], [0, 0, 1, 1], [], []>} : vector<2x32xf32>, vector<32x8xf32>, vector<2x8xf32> -> vector<2x8xf32>
    %37 = vector.broadcast %25 : vector<1x8xf32> to vector<2x8xf32>
    %38 = arith.addf %36, %37 : vector<2x8xf32>
    "tpu.trace_start"() <{level = 10 : i32, message = "boc,bct->bot"}> : () -> ()
    %cst_26 = arith.constant dense<0.000000e+00> : vector<2x8x128xf32>
    %39 = tpu.matmul %35, %0, %cst_26 {dimension_numbers = #tpu.dot_dimension_numbers<[2], [1], [1], [2], [0, 0, 0, 1, 1, 2], [0], [0]>} : vector<2x8x32xf32>, vector<2x32x128xf32>, vector<2x8x128xf32> -> vector<2x8x128xf32>
    "tpu.trace_stop"() : () -> ()
    %40 = vector.shape_cast %38 : vector<2x8xf32> to vector<2x8x1xf32>
    %41 = vector.broadcast %40 : vector<2x8x1xf32> to vector<2x8x128xf32>
    %42 = arith.addf %39, %41 : vector<2x8x128xf32>
    %c0_27 = arith.constant 0 : index
    %c0_28 = arith.constant 0 : index
    %c0_29 = arith.constant 0 : index
    %43 = vector.load %arg9[%c0_27, %c0_28, %c0_29] : memref<2x8x128xf32, #tpu.memory_space<vmem>>, vector<2x8x128xf32>
    tpu.vector_store %arg9[%c0_27, %c0_28, %c0_29], %42 {strides = array<i32>} : memref<2x8x128xf32, #tpu.memory_space<vmem>>, vector<2x8x128xf32>,
    return
  }
  func.func @transform_0(%arg0: i32) -> (i32, i32, i32) {
    %c0_i32 = arith.constant 0 : i32
    %c0_i32_0 = arith.constant 0 : i32
    %c0_i32_1 = arith.constant 0 : i32
    return %arg0, %c0_i32, %c0_i32_0 : i32, i32, i32
  }
  func.func @transform_1(%arg0: i32) -> (i32, i32) {
    %c0_i32 = arith.constant 0 : i32
    %c0_i32_0 = arith.constant 0 : i32
    %c0_i32_1 = arith.constant 0 : i32
    return %c0_i32, %c0_i32_0 : i32, i32
  }
  func.func @transform_2(%arg0: i32) -> (i32, i32) {
    %c0_i32 = arith.constant 0 : i32
    %c0_i32_0 = arith.constant 0 : i32
    %c0_i32_1 = arith.constant 0 : i32
    return %c0_i32, %c0_i32_0 : i32, i32
  }
  func.func @transform_3(%arg0: i32) -> (i32, i32) {
    %c0_i32 = arith.constant 0 : i32
    %c0_i32_0 = arith.constant 0 : i32
    %c0_i32_1 = arith.constant 0 : i32
    return %c0_i32, %c0_i32_0 : i32, i32
  }
  func.func @transform_4(%arg0: i32) -> (i32, i32) {
    %c0_i32 = arith.constant 0 : i32
    %c0_i32_0 = arith.constant 0 : i32
    %c0_i32_1 = arith.constant 0 : i32
    return %c0_i32, %c0_i32_0 : i32, i32
  }
  func.func @transform_5(%arg0: i32) -> (i32, i32) {
    %c0_i32 = arith.constant 0 : i32
    %c0_i32_0 = arith.constant 0 : i32
    %c0_i32_1 = arith.constant 0 : i32
    return %c0_i32, %c0_i32_0 : i32, i32
  }
  func.func @transform_6(%arg0: i32) -> (i32, i32) {
    %c0_i32 = arith.constant 0 : i32
    %c0_i32_0 = arith.constant 0 : i32
    %c0_i32_1 = arith.constant 0 : i32
    return %c0_i32, %c0_i32_0 : i32, i32
  }
  func.func @transform_7(%arg0: i32) -> (i32, i32) {
    %c0_i32 = arith.constant 0 : i32
    %c0_i32_0 = arith.constant 0 : i32
    %c0_i32_1 = arith.constant 0 : i32
    return %c0_i32, %c0_i32_0 : i32, i32
  }
  func.func @transform_8(%arg0: i32) -> (i32, i32, i32) {
    %c0_i32 = arith.constant 0 : i32
    %c0_i32_0 = arith.constant 0 : i32
    %c0_i32_1 = arith.constant 0 : i32
    return %arg0, %c0_i32, %c0_i32_0 : i32, i32, i32
  }
}

</mosaic_0001>

<bundles_post_ra>
// kernel: tpu_custom_call.1
= control target key start
LH: loop header
LB: loop body
LE: loop exit
PB: predicated region body
PF: predicated region fallthrough
CT: control target
= control target key end

     0   :  { %13 = vsyncpa [#allocation3], 0  ;;  %s640_s0 = inlined_call_operand.vmem [shape: f32[2,32,128], index: 0, kind: input, shape index: {}]   ;;  %s641_s1 = inlined_call_operand.vmem [shape: f32[16,32], index: 1, kind: input, shape index: {}]   ;;  %s642_s2 = inlined_call_operand.vmem [shape: f32[32,16], index: 2, kind: input, shape index: {}]   ;;  %s643_s3 = inlined_call_operand.vmem [shape: f32[1,32], index: 3, kind: input, shape index: {}]   ;;  %s644_s4 = inlined_call_operand.vmem [shape: f32[1,32], index: 4, kind: input, shape index: {}]   ;;  %s645_s5 = inlined_call_operand.hbm [shape: f32[8,32], index: 5, kind: input, shape index: {}]   ;;  %s646_s6 = inlined_call_operand.vmem [shape: f32[32,8], index: 6, kind: input, shape index: {}]   ;;  %s647_s7 = inlined_call_operand.vmem [shape: f32[1,8], index: 7, kind: input, shape index: {}]   ;;  %s648_s8 = inlined_call_operand.hbm [shape: f32[2,8,128], index: 8, kind: output, shape index: {}]  }
   0x1   :  { %14 = vsyncpa [#allocation4], 0  ;;  %s30_s29 = sshll.u32 %s645_s5, 4  ;;  %s474_s30 = smov [#allocation2]   ;;  %s31_s29 = int_to_ptr.hbm [resolvable:$true] %s30_s29 }
   0x2   :  { %s32_s9 = sshll.u32 %s474_s30, 4  ;;  %s33_s9 = int_to_ptr.vmem [resolvable:$true] %s32_s9 }
   0x3   :  { %35 = dma.hbm_to_vmem [thread:$0]  %s31_s29, 128, %s33_s9, [#allocation3]  }
   0x4   :  { %470 = dma.done.wait [#allocation3], 128  }
   0x5   :  { %471 = vsyncadd [#allocation3], 4294967168  ;;  %v48_v0 = vld [vmem:[%s640_s0 + $0x20] sm:$0xff]  ;;  %v538_v2 = vld [vmem:[%s640_s0 + $0x10] sm:$0xff]  ;;  %v106_v22 = vlaneseq  ;;  %vm111_vm0 = vcmask 130112   ;;  %vm115_vm1 = vcmask 195712  }
   0x6   :  { %v533_v1 = vld [vmem:[%s640_s0] sm:$0xff]  ;;  %60 = vadd.xlane.f32.xlu1 %v48_v0  ;;  %56 = vadd.xlane.f32.xlu2 %v538_v2  ;;  %v49_v3 = vld [vmem:[%s640_s0 + $0x28] sm:$0xff]  ;;  %v50_v5 = vld [vmem:[%s640_s0 + $0x30] sm:$0xff]  ;;  %v72_v9 = vmul.f32 %v48_v0, %v48_v0  ;;  %v70_v13 = vmul.f32 %v538_v2, %v538_v2  ;;  %vm119_vm2 = vcmask 261312   ;;  %vm128_vm3 = vcmask 1041409   ;;  %s387_s25 = sshll.u32 %s648_s8, 4  ;;  %s388_s25 = int_to_ptr.hbm [resolvable:$true] %s387_s25 }
   0x7   :  { %52 = vadd.xlane.f32.xlu0 %v533_v1  ;;  %v548_v4 = vld [vmem:[%s640_s0 + $0x8] sm:$0xff]  ;;  %v51_v6 = vld [vmem:[%s640_s0 + $0x38] sm:$0xff]  ;;  %v68_v8 = vmul.f32 %v533_v1, %v533_v1  ;;  %v73_v11 = vmul.f32 %v49_v3, %v49_v3  ;;  %v74_v12 = vmul.f32 %v50_v5, %v50_v5  ;;  %v96_v17 = vld [vmem:[%s642_s2 + $0x10] sm:$0xff]  ;;  %v107_v24 = vand.u32 127, %v106_v22  ;;  %s478_s26 = smov 8  }
   0x8   :  { %v560_v7 = vld [vmem:[%s640_s0 + $0x18] sm:$0xff]  ;;  %v69_v10 = vmul.f32 %v548_v4, %v548_v4  ;;  %v75_v15 = vmul.f32 %v51_v6, %v51_v6  ;;  %v95_v18 = vld [vmem:[%s642_s2 + $0x8] sm:$0xff]  ;;  %v94_v19 = vld [vmem:[%s642_s2] sm:$0xff]  ;;  %vm130_vm4 = vcmask 261120   ;;  %vm221_vm6 = vcmask 130048  }
   0x9   :  { %v71_v14 = vmul.f32 %v560_v7, %v560_v7  ;;  %v97_v16 = vld [vmem:[%s642_s2 + $0x18] sm:$0xff]  ;;  %v109_v25 = vadd.s32 4294967288, %v107_v24  ;;  %v113_v29 = vadd.s32 4294967280, %v107_v24  ;;  %v117_v34 = vadd.s32 4294967272, %v107_v24 }
   0xa   :  { %145 = vmatpush.msra.mxu0 %v97_v16  ;;  %190 = vmatpush.msra.mxu1 %v97_v16 }
   0xc   :  { %146 = vmatpush.msra.mxu0 %v96_v17  ;;  %191 = vmatpush.msra.mxu1 %v96_v17 }
   0xe   :  { %62 = vadd.xlane.f32.xlu1 %v49_v3  ;;  %64 = vadd.xlane.f32.xlu2 %v50_v5 }
   0xf   :  { %54 = vadd.xlane.f32.xlu0 %v548_v4  ;;  %147 = vmatpush.msra.mxu0 %v95_v18 }
  0x10   :  { %192 = vmatpush.msra.mxu1 %v95_v18 }
  0x11   :  { %148 = vmatpush.msra.mxu0 %v94_v19 }
  0x12   :  { %193 = vmatpush.msra.mxu1 %v94_v19 }
  0x13   :  { %371 = vmatpush.msrb.mxu0 %v51_v6 }
  0x15   :  { %372 = vmatpush.msrb.mxu0 %v50_v5 }
  0x16   :  { %66 = vadd.xlane.f32.xlu1 %v51_v6  ;;  %76 = vadd.xlane.f32.xlu2 %v68_v8 }
  0x17   :  { %58 = vadd.xlane.f32.xlu0 %v560_v7  ;;  %373 = vmatpush.msrb.mxu0 %v49_v3 }
  0x19   :  { %374 = vmatpush.msrb.mxu0 %v48_v0 }
  0x1e   :  { %84 = vadd.xlane.f32.xlu1 %v72_v9  ;;  %86 = vadd.xlane.f32.xlu2 %v73_v11  ;;  %v93_v11 = vld [vmem:[%s641_s1 + $0x8] sm:$0xff] }
  0x1f   :  { %78 = vadd.xlane.f32.xlu0 %v69_v10  ;;  %239 = vmatpush.msra.mxu2 %v93_v11 }
  0x20   :  { %262 = vmatpush.msra.mxu3 %v93_v11 }
  0x26   :  { %88 = vadd.xlane.f32.xlu1 %v74_v12  ;;  %82 = vadd.xlane.f32.xlu2 %v71_v14  ;;  %v92_v12 = vld [vmem:[%s641_s1] sm:$0xff] }
  0x27   :  { %80 = vadd.xlane.f32.xlu0 %v70_v13  ;;  %240 = vmatpush.msra.mxu2 %v92_v12  ;;  %v475_v13 = vmov 256.0  }
  0x28   :  { %263 = vmatpush.msra.mxu3 %v92_v12  ;;  %418 = vrcp.f32 %v475_v13 }
  0x2a   :  { %348 = vmatpush.msrb.mxu3 %v560_v7 }
  0x2c   :  { %349 = vmatpush.msrb.mxu3 %v538_v2 }
  0x2e   :  { %350 = vmatpush.msrb.mxu3 %v548_v4  ;;  %v419_v14 = vpop.eup %418 }
  0x2f   :  { %90 = vadd.xlane.f32.xlu0 %v75_v15  ;;  %v199_v15 = vmul.f32 256.0, %v419_v14  ;;  %vm203_vm5 = vweird.f32 %v419_v14 }
  0x30   :  { %351 = vmatpush.msrb.mxu3 %v533_v1 }
  0x31   :  { %v200_v16 = vsub.f32 1.0, %v199_v15 }
  0x33   :  { %v201_v17 = vmul.f32 %v419_v14, %v200_v16 }
  0x35   :  { %v202_v18 = vadd.f32 %v419_v14, %v201_v17 }
  0x37   :  { %v204_v19 = vsel %vm203_vm5, %v419_v14, %v202_v18 }
  0x79   :  { %v61_v20 = vpop.xlane.xlu1 %60  ;;  %v57_v23 = vpop.xlane.xlu2 %56 }
  0x7a   :  { %v53_v21 = vpop.xlane.xlu0 %52  ;;  %v121_v30 = vperm.slane %v61_v20, %v107_v24  ;;  %v114_v35 = vperm.slane %v57_v23, %v113_v29 }
  0x7b   :  { %v108_v33 = vperm.slane %v53_v21, %v107_v24 }
  0x81   :  { %v63_v26 = vpop.xlane.xlu1 %62  ;;  %v65_v28 = vpop.xlane.xlu2 %64 }
  0x82   :  { %v55_v27 = vpop.xlane.xlu0 %54  ;;  %v122_v31 = vperm.slane %v63_v26, %v109_v25  ;;  %v124_v36 = vperm.slane %v65_v28, %v113_v29 }
  0x83   :  { %v110_v32 = vperm.slane %v55_v27, %v109_v25 }
  0x84   :  { %v123_v37 = vsel %vm111_vm0, %v122_v31, %v121_v30 }
  0x85   :  { %v112_v38 = vsel %vm111_vm0, %v110_v32, %v108_v33  ;;  %v125_v44 = vsel %vm115_vm1, %v124_v36, %v123_v37  ;;  %v274_v32 = vld [vmem:[%s646_s6 + $0x18] sm:$0xff]  ;;  %v273_v33 = vld [vmem:[%s646_s6 + $0x10] sm:$0xff]  ;;  %v415_v36 = vld [vmem:[%s643_s3] ss:$0 sm:$0xff] }
  0x86   :  { %v116_v45 = vsel %vm115_vm1, %v114_v35, %v112_v38  ;;  %311 = vmatpush.msrb.mxu2 %v274_v32  ;;  %v271_v35 = vld [vmem:[%s646_s6] sm:$0xff] }
  0x88   :  { %312 = vmatpush.msrb.mxu2 %v273_v33 }
  0x89   :  { %v67_v39 = vpop.xlane.xlu1 %66  ;;  %v77_v43 = vpop.xlane.xlu2 %76 }
  0x8a   :  { %v59_v40 = vpop.xlane.xlu0 %58  ;;  %v126_v41 = vperm.slane %v67_v39, %v117_v34  ;;  %v161_v53 = vperm.slane %v77_v43, %v107_v24  ;;  %v416_v39 = vld [vmem:[%s644_s4] ss:$0 sm:$0xff] }
  0x8b   :  { %v118_v42 = vperm.slane %v59_v40, %v117_v34 }
  0x8c   :  { %v127_v47 = vsel %vm119_vm2, %v126_v41, %v125_v44  ;;  %v270_v41 = vld [vmem:[#allocation2] sm:$0xff] }
  0x8d   :  { %v120_v46 = vsel %vm119_vm2, %v118_v42, %v116_v45 }
  0x8e   :  { %v129_v48 = vsel %vm128_vm3, %v127_v47, %v120_v46 }
  0x8f   :  { %400 = vmatmul.msk.f32.vlgmr.msra.gmra.mxu0 %vm130_vm4, %v129_v48 }
  0x91   :  { %v85_v50 = vpop.xlane.xlu1 %84  ;;  %v87_v51 = vpop.xlane.xlu2 %86 }
  0x92   :  { %v79_v49 = vpop.xlane.xlu0 %78  ;;  %v168_v54 = vperm.slane %v85_v50, %v107_v24  ;;  %v169_v56 = vperm.slane %v87_v51, %v109_v25  ;;  %v417_v50 = vld [vmem:[%s647_s7] ss:$0 sm:$0xff]  ;;  %s477_s7 = smov 128  }
  0x93   :  { %v162_v55 = vperm.slane %v79_v49, %v109_v25  ;;  %v321_v49 = vshrl.u32 %v106_v22, 7 }
  0x94   :  { %v170_v62 = vsel %vm111_vm0, %v169_v56, %v168_v54 }
  0x95   :  { %v163_v61 = vsel %vm111_vm0, %v162_v55, %v161_v53  ;;  %413 = vset.pattern.permute.xlu2 %v321_v49  ;;  %412 = vset.pattern.permute.xlu1 %v321_v49 }
  0x96   :  { %414 = vset.pattern.permute.xlu0 %v321_v49 }
  0x99   :  { %v89_v57 = vpop.xlane.xlu1 %88  ;;  %v83_v59 = vpop.xlane.xlu2 %82 }
  0x9a   :  { %v81_v52 = vpop.xlane.xlu0 %80  ;;  %v171_v60 = vperm.slane %v89_v57, %v113_v29  ;;  %v166_v63 = vperm.slane %v83_v59, %v117_v34 }
  0x9b   :  { %v164_v58 = vperm.slane %v81_v52, %v113_v29 }
  0x9c   :  { %v172_v6 = vsel %vm115_vm1, %v171_v60, %v170_v62 }
  0x9d   :  { %v165_v0 = vsel %vm115_vm1, %v164_v58, %v163_v61 }
  0x9e   :  { %v167_v8 = vsel %vm119_vm2, %v166_v63, %v165_v0 }
  0xa2   :  { %v91_v3 = vpop.xlane.xlu0 %90 }
  0xa3   :  { %v173_v5 = vperm.slane %v91_v3, %v117_v34  ;;  %v272_v34 = vld [vmem:[%s646_s6 + $0x8] sm:$0xff]  ;;  %s476_s6 = smov [#allocation5]  }
  0xa4   :  { %313 = vmatpush.msrb.mxu2 %v272_v34  ;;  %s385_s23 = sshll.u32 %s476_s6, 4  ;;  %s386_s23 = int_to_ptr.vmem [resolvable:$true] %s385_s23 }
  0xa5   :  { %v174_v9 = vsel %vm119_vm2, %v173_v5, %v172_v6 }
  0xa6   :  { %v175_v10 = vsel %vm128_vm3, %v174_v9, %v167_v8  ;;  %314 = vmatpush.msrb.mxu2 %v271_v35 }
  0xa7   :  { %401 = vmatmul.msk.f32.vlgmr.msra.gmra.mxu1 %vm130_vm4, %v175_v10 }
 0x10c   :  { %v150_v20 = vpop.f32.mrf.mxu0 }
 0x10d   :  { %v205_v21 = vmul.f32 %v204_v19, %v150_v20 }
 0x10f   :  { %402 = vmatmul.msk.f32.vlgmr.msra.gmra.mxu2 %vm221_vm6, %v205_v21  ;;  %v207_v23 = vmul.f32 %v205_v21, %v205_v21 }
 0x124   :  { %v195_v7 = vpop.f32.mrf.mxu1 }
 0x125   :  { %v206_v24 = vmul.f32 %v204_v19, %v195_v7 }
 0x127   :  { %v208_v2 = vsub.f32 %v206_v24, %v207_v23 }
 0x129   :  { %v209_v25 = vmax.f32 %v208_v2, 0.0 }
 0x12b   :  { %v210_v4 = vadd.f32 1e-05, %v209_v25 }
 0x12d   :  { %420 = vrsqrt.f32 %v210_v4  ;;  %vm217_vm8 = vweird.f32 %v210_v4 }
 0x133   :  { %v421_v1 = vpop.eup %420 }
 0x134   :  { %v212_v26 = vmul.f32 %v421_v1, %v210_v4  ;;  %vm218_vm7 = vweird.f32 %v421_v1 }
 0x135   :  { %vm219_vm9 = vmor %vm217_vm8, %vm218_vm7 }
 0x136   :  { %v213_v27 = vmul.f32 %v421_v1, %v212_v26 }
 0x138   :  { %v214_v28 = vmul.f32 0.5, %v213_v27 }
 0x13a   :  { %v215_v29 = vsub.f32 1.5, %v214_v28 }
 0x13c   :  { %v216_v30 = vmul.f32 %v421_v1, %v215_v29 }
 0x13e   :  { %v220_v31 = vsel %vm219_vm9, %v421_v1, %v216_v30 }
 0x13f   :  { %403 = vmatmul.msk.f32.vlgmr.msra.gmra.mxu3 %vm221_vm6, %v220_v31 }
 0x192   :  { %v242_v40 = vpop.f32.mrf.mxu2 }
 0x1c2   :  { %v265_v37 = vpop.f32.mrf.mxu3 }
 0x1c3   :  { %v279_v38 = vmul.f32 %v415_v36, %v265_v37 }
 0x1c5   :  { %v280_v42 = vmul.f32 %v279_v38, %v242_v40  ;;  %v286_v43 = vrot.slane %v279_v38, 1  ;;  %v287_v44 = vperm.slane %v279_v38, 0 }
 0x1c7   :  { %v284_v45 = vsub.f32 %v416_v39, %v280_v42  ;;  %v288_v46 = vperm.slane %v286_v43, 0  ;;  %v291_v47 = vmul.f32 %v287_v44, %v270_v41 }
 0x1c9   :  { %404 = vmatmul.msk.f32.vlgmr.msrb.gmra.mxu2 %vm130_vm4, %v284_v45  ;;  %405 = vmatmul.msk.f32.vlgmr.msrb.gmra.mxu3 %vm130_vm4, %v291_v47  ;;  %v292_v48 = vmul.f32 %v288_v46, %v270_v41 }
 0x1cb   :  { %406 = vmatmul.msk.f32.vlgmr.msrb.gmra.mxu0 %vm130_vm4, %v292_v48 }
 0x248   :  { %v376_v55 = vpop.f32.mrf.mxu0 }
 0x24c   :  { %v316_v51 = vpop.f32.mrf.mxu2  ;;  %v353_v22 = vpop.f32.mrf.mxu3 }
 0x24d   :  { %v317_v52 = vadd.f32 %v417_v50, %v316_v51 }
 0x24f   :  { %v319_v53 = vperm.slane %v317_v52, 0  ;;  %v326_v54 = vperm.slane %v317_v52, 1 }
 0x251   :  { %331 = vperm.xlu2 %413, %v326_v54   ;;  %324 = vperm.xlu1 %412, %v319_v53  }
 0x2ab   :  { %v332_v56 = vpop.permute.xlu2 %331 }
 0x2ac   :  { %v377_v57 = vadd.f32 %v376_v55, %v332_v56 }
 0x2ae   :  { %380 = vst [vmem:[#allocation5 + $0x8] sm:$0xff] %v377_v57 }
 0x2c3   :  { %v325_v58 = vpop.permute.xlu1 %324 }
 0x2c4   :  { %v354_v59 = vadd.f32 %v353_v22, %v325_v58 }
 0x2c6   :  { %379 = vst [vmem:[#allocation5] sm:$0xff] %v354_v59 }
 0x2c7   :  { %393 = dma.vmem_to_hbm [thread:$0]  %s386_s23, 256, %s388_s25, [#allocation4], %s477_s7, %s477_s7, %s478_s26  }
 0x2c8   :  { %472 = dma.done.wait [#allocation4], 256  }
 0x2c9   :  { %473 = vsyncadd [#allocation4], 4294967040 }
 0x2ca   :  { %398 = vsyncpa [#allocation3], 1 }
 0x2cb   :  { %399 = vsyncpa [#allocation4], 1 }

</bundles_post_ra>
